<compile_context>
chip_gen: v7x
topology: tpu7x:2x2x1
jax: 0.10.0
libtpu: 0.0.40
codegen_flags: <defaults>
</compile_context>

<pallas_src>
import functools

import numpy as np

import jax
import jax.numpy as jnp
from jax.experimental import pallas as pl
from jax.experimental.pallas import tpu as pltpu


_VMEM_LIMIT_BYTES = 32 * 1024 * 1024   # safe on every generation (v7x: 64 MiB phys.)
_SUB = 8                               # f32 sublane granule


def _round_up(a, b):
    return (a + b - 1) // b * b


def _cdiv(a, b):
    return (a + b - 1) // b


def _pick_tiles(bc, hw):
    """Pick (bc_tile, nt, bc_pad).

    Per-block working set for the pool kernel is roughly
    (noise + x + y) * 2 (double buffer) + ~4 f32 pooling temporaries
    ~= 45-60 B/elem, so blocks are capped at ~8 MiB to stay well inside the
    32 MiB scoped VMEM budget on every generation.  At least two tiles are
    used when BC allows it so v7x's second TensorCore gets work.
    """
    max_elems = (8 * 1024 * 1024) // 48
    cap = max(_SUB, (min(4096, max(_SUB, max_elems // max(1, hw))) // _SUB) * _SUB)
    bc_r = _round_up(bc, _SUB)
    nt_min = 2 if bc_r >= 2 * _SUB else 1
    nt = max(nt_min, _cdiv(bc_r, cap))
    tile = _round_up(_cdiv(bc_r, nt), _SUB)
    nt = _cdiv(bc_r, tile)
    return tile, nt, tile * nt


def _shift_lanes(v, s, hw):
    """out[:, f] = v[:, f + s] if 0 <= f + s < hw else 0 (no wraparound)."""
    if s == 0:
        return v
    rows = v.shape[0]
    if s > 0:
        return jnp.concatenate([v[:, s:], jnp.zeros((rows, s), v.dtype)], axis=1)
    return jnp.concatenate([jnp.zeros((rows, -s), v.dtype), v[:, :hw + s]], axis=1)


def _drop_block_kernel(noise_ref, x_ref, wmask_ref, y_ref, psum_ref, *,
                       gamma, H, W, cbs):
    """Per BC tile: drop = noise < gamma; keep = 1 - maxpool(drop, cbs, s=1,
    pad=cbs//2); writes y = x * keep and the tile's keep count."""
    hw = H * W
    p_lo = cbs // 2
    p_hi = cbs - 1 - p_lo
    # NOTE: for even cbs this yields an HxW pool (PyTorch's max_pool2d would
    # produce (H+1)x(W+1) and the torch reference itself then breaks); the
    # default odd cbs matches exactly.

    drop = (noise_ref[...] < gamma).astype(jnp.float32)       # (bc_tile, hw)

    # Row (W) direction: lane shifts; validity masks are a precomputed resident
    # input (1.0 where the shift stays inside the same image row).
    row_max = drop                                             # dw = 0 term
    j = 0
    for dw in range(-p_lo, p_hi + 1):
        if dw == 0:
            continue
        m = wmask_ref[j:j + 1, :]                              # (1, hw)
        row_max = jnp.maximum(row_max, _shift_lanes(drop, dw, hw) * m)
        j += 1

    # Column (H) direction: shifts by whole rows; zero fill handles the H edge.
    pooled = row_max                                           # dh = 0 term
    for dh in range(-p_lo, p_hi + 1):
        if dh == 0:
            continue
        pooled = jnp.maximum(pooled, _shift_lanes(row_max, dh * W, hw))

    keep = 1.0 - pooled
    psum_ref[...] = jnp.full(psum_ref.shape, jnp.sum(keep), jnp.float32)
    y_ref[...] = x_ref[...] * keep.astype(y_ref.dtype)


def _scale_kernel(y_ref, scale_ref, o_ref):
    """out = y * normalize_scale (scale is a runtime scalar in SMEM)."""
    o_ref[...] = y_ref[...] * scale_ref[0, 0].astype(o_ref.dtype)


def drop_block_fast_2d_pallas(x, key, drop_prob=0.1, block_size=7,
                              gamma_scale=1.0, noise=None):
    """Equivalent of timm drop_block_fast_2d(x, ..., with_noise=False,
    batchwise=False, inplace=False).  `noise` (same shape as x, uniform [0,1))
    is optional and mainly for testing; by default it is drawn from `key`."""
    B, C, H, W = x.shape
    cbs = min(block_size, H, W)
    denom = (W - block_size + 1) * (H - block_size + 1)
    if denom <= 0:
        raise ValueError(
            "drop_block: spatial dims must satisfy H, W >= block_size "
            f"(got H={H}, W={W}, block_size={block_size})")
    gamma = float(gamma_scale) * float(drop_prob) * (H * W) / (cbs ** 2) / denom

    hw = H * W
    bc = B * C
    bc_tile, nt, bc_pad = _pick_tiles(bc, hw)

    # Lane-dense layout: pure reshape, HW on the lane axis.
    x2 = x.reshape(bc, hw)
    if noise is None:
        noise2 = jax.random.uniform(key, (bc, hw), dtype=jnp.float32)
    else:
        noise2 = noise.reshape(bc, hw).astype(jnp.float32)
    if bc_pad != bc:
        x2 = jnp.pad(x2, ((0, bc_pad - bc), (0, 0)))
        # Pad noise with 0.0: padded rows become full-drop -> keep == 0, so they
        # contribute nothing to the keep count and need no in-kernel masking.
        noise2 = jnp.pad(noise2, ((0, bc_pad - bc), (0, 0)), constant_values=0.0)

    # Precomputed W-direction shift-validity masks (depend only on lane index).
    p_lo = cbs // 2
    p_hi = cbs - 1 - p_lo
    n_dw = cbs - 1
    wm_rows = max(_SUB, _round_up(max(n_dw, 1), _SUB))
    wmask_np = np.zeros((wm_rows, hw), np.float32)
    w_of_f = np.arange(hw) % W
    j = 0
    for dw in range(-p_lo, p_hi + 1):
        if dw == 0:
            continue
        wmask_np[j] = ((w_of_f + dw >= 0) & (w_of_f + dw < W)).astype(np.float32)
        j += 1
    wmask = jnp.asarray(wmask_np)

    cparams = pltpu.CompilerParams(
        dimension_semantics=("parallel",),      # BC tiles shard across TCs (v7x)
        vmem_limit_bytes=_VMEM_LIMIT_BYTES)

    # ---- pass 1: pooled keep mask folded into y = x * keep + per-tile counts ----
    kern1 = functools.partial(_drop_block_kernel, gamma=gamma, H=H, W=W, cbs=cbs)
    y, psums = pl.pallas_call(
        kern1,
        grid=(nt,),
        in_specs=[pl.BlockSpec((bc_tile, hw), lambda i: (i, 0)),     # noise
                  pl.BlockSpec((bc_tile, hw), lambda i: (i, 0)),     # x
                  pl.BlockSpec((wm_rows, hw), lambda i: (0, 0))],    # resident masks
        out_specs=(pl.BlockSpec((bc_tile, hw), lambda i: (i, 0)),    # y
                   pl.BlockSpec((1, 8, 128), lambda i: (i, 0, 0))),  # psum
        out_shape=(jax.ShapeDtypeStruct((bc_pad, hw), x.dtype),
                   jax.ShapeDtypeStruct((nt, 8, 128), jnp.float32)),
        compiler_params=cparams,
    )(noise2, x2, wmask)

    # ---- tiny XLA reduce: global normalize_scale (matches torch fast path) ------
    numel = float(bc * hw)                      # un-padded block_mask.numel()
    total = jnp.sum(psums[:, 0, 0])
    scale = (numel / (total + 1e-7)).astype(jnp.float32).reshape(1, 1)

    # ---- pass 2: out = y * scale (memory-bound, lane-dense stream) --------------
    out = pl.pallas_call(
        _scale_kernel,
        grid=(nt,),
        in_specs=[pl.BlockSpec((bc_tile, hw), lambda i: (i, 0)),
                  pl.BlockSpec(memory_space=pltpu.MemorySpace.SMEM)],
        out_specs=pl.BlockSpec((bc_tile, hw), lambda i: (i, 0)),
        out_shape=jax.ShapeDtypeStruct((bc_pad, hw), x.dtype),
        compiler_params=cparams,
    )(y, scale)

    return out[:bc].reshape(B, C, H, W)


class DropBlock2d:
    """JAX/Pallas port of the PyTorch DropBlock2d module (fast path)."""

    def __init__(self, drop_prob=0.1, block_size=7, gamma_scale=1.0,
                 with_noise=False, inplace=False, batchwise=False, fast=True):
        self.drop_prob = drop_prob
        self.block_size = block_size
        self.gamma_scale = gamma_scale
        self.with_noise = with_noise
        self.inplace = inplace          # no-op in JAX (functional)
        self.batchwise = batchwise
        self.fast = fast
        # TODO(synk): with_noise / batchwise / non-fast (valid-block) variants
        # are not implemented in the kernel; only the default fast path is.

    def __call__(self, x, key, training=True):
        if not training or not self.drop_prob:
            return x
        assert self.fast and not self.with_noise and not self.batchwise, \
            "only the default fast DropBlock path is implemented"
        return drop_block_fast_2d_pallas(
            x, key,
            drop_prob=self.drop_prob,
            block_size=self.block_size,
            gamma_scale=self.gamma_scale)


def _reference_fast_2d(x, noise, drop_prob, block_size, gamma_scale):
    """Pure-JAX port of timm drop_block_fast_2d (with_noise=False), for testing."""
    B, C, H, W = x.shape
    cbs = min(block_size, H, W)
    gamma = (gamma_scale * drop_prob * (H * W) / cbs ** 2 /
             ((W - block_size + 1) * (H - block_size + 1)))
    seed = (noise < gamma).astype(jnp.float32)
    p = cbs // 2
    pooled = jax.lax.reduce_window(
        seed, -jnp.inf, jax.lax.max,
        window_dimensions=(1, 1, cbs, cbs),
        window_strides=(1, 1, 1, 1),
        padding=((0, 0), (0, 0), (p, cbs - 1 - p), (p, cbs - 1 - p)))
    keep = 1.0 - pooled
    scale = keep.size / (jnp.sum(keep) + 1e-7)
    return (x * keep * scale).astype(x.dtype)


if __name__ == "__main__":
    key = jax.random.PRNGKey(0)
    kx, kdrop, knoise = jax.random.split(key, 3)
    x = jax.random.normal(kx, (2, 4, 16, 16), dtype=jnp.float32)   # NCHW

    mod = DropBlock2d(drop_prob=0.1, block_size=7)
    y = mod(x, kdrop, training=True)
    jax.block_until_ready(y)
    assert y.shape == x.shape and y.dtype == x.dtype

    # Internal-noise path sanity: y/x only takes the two values {0, scale}, with
    # scale consistent with the dropped-element count (checks pool + normalize).
    dropped = (y == 0.0)
    n_keep = y.size - int(jnp.sum(dropped))
    scale_expected = y.size / (n_keep + 1e-7)
    ratio = jnp.where(dropped, scale_expected, y / jnp.where(x == 0.0, 1.0, x))
    assert bool(jnp.all(jnp.abs(ratio - scale_expected) <= 1e-3 * scale_expected)), \
        "output is not x * {0, scale}"

    # Exact check of the pool / normalization math against a pure-JAX reference,
    # using externally supplied noise through the very same kernels.
    noise = jax.random.uniform(knoise, x.shape, dtype=jnp.float32)
    y_ext = drop_block_fast_2d_pallas(x, kdrop, drop_prob=0.1, block_size=7,
                                      gamma_scale=1.0, noise=noise)
    y_ref = _reference_fast_2d(x, noise, 0.1, 7, 1.0)
    jax.block_until_ready((y_ext, y_ref))
    assert bool(jnp.allclose(y_ext, y_ref, rtol=1e-5, atol=1e-5)), \
        "mismatch vs pure-JAX drop_block_fast_2d reference"

    print("KERNEL_OK")
</pallas_src>

<mosaic_0001>
module attributes {stable_mosaic.version = 11 : i64} {
  func.func @_drop_block_kernel(%arg0: i32, %arg1: memref<8x256xf32, #tpu.memory_space<vmem>>, %arg2: memref<8x256xf32, #tpu.memory_space<vmem>>, %arg3: memref<8x256xf32, #tpu.memory_space<vmem>>, %arg4: memref<8x256xf32, #tpu.memory_space<vmem>>, %arg5: memref<1x8x128xf32, #tpu.memory_space<vmem>>) attributes {dimension_semantics = [#tpu.dimension_semantics<parallel>], iteration_bounds = array<i64: 1>, scalar_prefetch = 0 : i64, scratch_operands = 0 : i64, tpu.core_type = #tpu.core_type<tc>, window_params = [{transform_indices = @transform_0, window_bounds = array<i64: 8, 256>}, {transform_indices = @transform_1, window_bounds = array<i64: 8, 256>}, {pipeline_mode = #tpu.pipeline_mode<synchronous>, transform_indices = @transform_2, window_bounds = array<i64: 8, 256>}, {transform_indices = @transform_3, window_bounds = array<i64: 8, 256>}, {transform_indices = @transform_4, window_bounds = array<i64: 1, 8, 128>}]} {
    %c0 = arith.constant 0 : index
    %c0_0 = arith.constant 0 : index
    %0 = vector.load %arg1[%c0, %c0_0] : memref<8x256xf32, #tpu.memory_space<vmem>>, vector<8x256xf32>
    %cst = arith.constant 0.00522448961 : f32
    %1 = vector.broadcast %cst : f32 to vector<8x256xf32>
    %2 = arith.cmpf olt, %0, %1 : vector<8x256xf32>
    %3 = arith.extui %2 : vector<8x256xi1> to vector<8x256xi32>
    %4 = arith.sitofp %3 : vector<8x256xi32> to vector<8x256xf32>
    %c0_1 = arith.constant 0 : index
    %c0_2 = arith.constant 0 : index
    %5 = vector.load %arg3[%c0_1, %c0_2] : memref<8x256xf32, #tpu.memory_space<vmem>>, vector<1x256xf32>
    %cst_3 = arith.constant 0.000000e+00 : f32
    %6 = vector.broadcast %cst_3 : f32 to vector<8x3xf32>
    %7 = vector.extract_strided_slice %4 {offsets = [0, 0], sizes = [8, 253], strides = [1, 1]} : vector<8x256xf32> to vector<8x253xf32>
    %8 = tpu.concatenate %6, %7 in 1 : vector<8x3xf32>, vector<8x253xf32> -> vector<8x256xf32>
    %9 = vector.broadcast %5 : vector<1x256xf32> to vector<8x256xf32>
    %10 = arith.mulf %8, %9 : vector<8x256xf32>
    %11 = arith.maximumf %4, %10 : vector<8x256xf32>
    %c1 = arith.constant 1 : index
    %c0_4 = arith.constant 0 : index
    %12 = vector.load %arg3[%c1, %c0_4] : memref<8x256xf32, #tpu.memory_space<vmem>>, vector<1x256xf32>
    %cst_5 = arith.constant 0.000000e+00 : f32
    %13 = vector.broadcast %cst_5 : f32 to vector<8x2xf32>
    %14 = vector.extract_strided_slice %4 {offsets = [0, 0], sizes = [8, 254], strides = [1, 1]} : vector<8x256xf32> to vector<8x254xf32>
    %15 = tpu.concatenate %13, %14 in 1 : vector<8x2xf32>, vector<8x254xf32> -> vector<8x256xf32>
    %16 = vector.broadcast %12 : vector<1x256xf32> to vector<8x256xf32>
    %17 = arith.mulf %15, %16 : vector<8x256xf32>
    %18 = arith.maximumf %11, %17 : vector<8x256xf32>
    %c2 = arith.constant 2 : index
    %c0_6 = arith.constant 0 : index
    %19 = vector.load %arg3[%c2, %c0_6] : memref<8x256xf32, #tpu.memory_space<vmem>>, vector<1x256xf32>
    %cst_7 = arith.constant 0.000000e+00 : f32
    %20 = vector.broadcast %cst_7 : f32 to vector<8x1xf32>
    %21 = vector.extract_strided_slice %4 {offsets = [0, 0], sizes = [8, 255], strides = [1, 1]} : vector<8x256xf32> to vector<8x255xf32>
    %22 = tpu.concatenate %20, %21 in 1 : vector<8x1xf32>, vector<8x255xf32> -> vector<8x256xf32>
    %23 = vector.broadcast %19 : vector<1x256xf32> to vector<8x256xf32>
    %24 = arith.mulf %22, %23 : vector<8x256xf32>
    %25 = arith.maximumf %18, %24 : vector<8x256xf32>
    %c3 = arith.constant 3 : index
    %c0_8 = arith.constant 0 : index
    %26 = vector.load %arg3[%c3, %c0_8] : memref<8x256xf32, #tpu.memory_space<vmem>>, vector<1x256xf32>
    %27 = vector.extract_strided_slice %4 {offsets = [0, 1], sizes = [8, 255], strides = [1, 1]} : vector<8x256xf32> to vector<8x255xf32>
    %cst_9 = arith.constant 0.000000e+00 : f32
    %28 = vector.broadcast %cst_9 : f32 to vector<8x1xf32>
    %29 = tpu.concatenate %27, %28 in 1 : vector<8x255xf32>, vector<8x1xf32> -> vector<8x256xf32>
    %30 = vector.broadcast %26 : vector<1x256xf32> to vector<8x256xf32>
    %31 = arith.mulf %29, %30 : vector<8x256xf32>
    %32 = arith.maximumf %25, %31 : vector<8x256xf32>
    %c4 = arith.constant 4 : index
    %c0_10 = arith.constant 0 : index
    %33 = vector.load %arg3[%c4, %c0_10] : memref<8x256xf32, #tpu.memory_space<vmem>>, vector<1x256xf32>
    %34 = vector.extract_strided_slice %4 {offsets = [0, 2], sizes = [8, 254], strides = [1, 1]} : vector<8x256xf32> to vector<8x254xf32>
    %cst_11 = arith.constant 0.000000e+00 : f32
    %35 = vector.broadcast %cst_11 : f32 to vector<8x2xf32>
    %36 = tpu.concatenate %34, %35 in 1 : vector<8x254xf32>, vector<8x2xf32> -> vector<8x256xf32>
    %37 = vector.broadcast %33 : vector<1x256xf32> to vector<8x256xf32>
    %38 = arith.mulf %36, %37 : vector<8x256xf32>
    %39 = arith.maximumf %32, %38 : vector<8x256xf32>
    %c5 = arith.constant 5 : index
    %c0_12 = arith.constant 0 : index
    %40 = vector.load %arg3[%c5, %c0_12] : memref<8x256xf32, #tpu.memory_space<vmem>>, vector<1x256xf32>
    %41 = vector.extract_strided_slice %4 {offsets = [0, 3], sizes = [8, 253], strides = [1, 1]} : vector<8x256xf32> to vector<8x253xf32>
    %cst_13 = arith.constant 0.000000e+00 : f32
    %42 = vector.broadcast %cst_13 : f32 to vector<8x3xf32>
    %43 = tpu.concatenate %41, %42 in 1 : vector<8x253xf32>, vector<8x3xf32> -> vector<8x256xf32>
    %44 = vector.broadcast %40 : vector<1x256xf32> to vector<8x256xf32>
    %45 = arith.mulf %43, %44 : vector<8x256xf32>
    %46 = arith.maximumf %39, %45 : vector<8x256xf32>
    %cst_14 = arith.constant 0.000000e+00 : f32
    %47 = vector.broadcast %cst_14 : f32 to vector<8x48xf32>
    %48 = vector.extract_strided_slice %46 {offsets = [0, 0], sizes = [8, 208], strides = [1, 1]} : vector<8x256xf32> to vector<8x208xf32>
    %49 = tpu.concatenate %47, %48 in 1 : vector<8x48xf32>, vector<8x208xf32> -> vector<8x256xf32>
    %50 = arith.maximumf %46, %49 : vector<8x256xf32>
    %cst_15 = arith.constant 0.000000e+00 : f32
    %51 = vector.broadcast %cst_15 : f32 to vector<8x32xf32>
    %52 = vector.extract_strided_slice %46 {offsets = [0, 0], sizes = [8, 224], strides = [1, 1]} : vector<8x256xf32> to vector<8x224xf32>
    %53 = tpu.concatenate %51, %52 in 1 : vector<8x32xf32>, vector<8x224xf32> -> vector<8x256xf32>
    %54 = arith.maximumf %50, %53 : vector<8x256xf32>
    %cst_16 = arith.constant 0.000000e+00 : f32
    %55 = vector.broadcast %cst_16 : f32 to vector<8x16xf32>
    %56 = vector.extract_strided_slice %46 {offsets = [0, 0], sizes = [8, 240], strides = [1, 1]} : vector<8x256xf32> to vector<8x240xf32>
    %57 = tpu.concatenate %55, %56 in 1 : vector<8x16xf32>, vector<8x240xf32> -> vector<8x256xf32>
    %58 = arith.maximumf %54, %57 : vector<8x256xf32>
    %59 = vector.extract_strided_slice %46 {offsets = [0, 16], sizes = [8, 240], strides = [1, 1]} : vector<8x256xf32> to vector<8x240xf32>
    %cst_17 = arith.constant 0.000000e+00 : f32
    %60 = vector.broadcast %cst_17 : f32 to vector<8x16xf32>
    %61 = tpu.concatenate %59, %60 in 1 : vector<8x240xf32>, vector<8x16xf32> -> vector<8x256xf32>
    %62 = arith.maximumf %58, %61 : vector<8x256xf32>
    %63 = vector.extract_strided_slice %46 {offsets = [0, 32], sizes = [8, 224], strides = [1, 1]} : vector<8x256xf32> to vector<8x224xf32>
    %cst_18 = arith.constant 0.000000e+00 : f32
    %64 = vector.broadcast %cst_18 : f32 to vector<8x32xf32>
    %65 = tpu.concatenate %63, %64 in 1 : vector<8x224xf32>, vector<8x32xf32> -> vector<8x256xf32>
    %66 = arith.maximumf %62, %65 : vector<8x256xf32>
    %67 = vector.extract_strided_slice %46 {offsets = [0, 48], sizes = [8, 208], strides = [1, 1]} : vector<8x256xf32> to vector<8x208xf32>
    %cst_19 = arith.constant 0.000000e+00 : f32
    %68 = vector.broadcast %cst_19 : f32 to vector<8x48xf32>
    %69 = tpu.concatenate %67, %68 in 1 : vector<8x208xf32>, vector<8x48xf32> -> vector<8x256xf32>
    %70 = arith.maximumf %66, %69 : vector<8x256xf32>
    %cst_20 = arith.constant 1.000000e+00 : f32
    %71 = vector.broadcast %cst_20 : f32 to vector<8x256xf32>
    %72 = arith.subf %71, %70 : vector<8x256xf32>
    %73 = vector.shape_cast %72 : vector<8x256xf32> to vector<1x8x256xf32>
    %cst_21 = arith.constant dense<0.000000e+00> : vector<1xf32>
    %74 = vector.multi_reduction <add>, %73, %cst_21 [1, 2] : vector<1x8x256xf32> to vector<1xf32>
    %75 = vector.shape_cast %74 : vector<1xf32> to vector<1x1x1xf32>
    %76 = vector.extract %75[0, 0, 0] : f32 from vector<1x1x1xf32>
    %77 = vector.broadcast %76 : f32 to vector<1x8x128xf32>
    %c0_22 = arith.constant 0 : index
    %c0_23 = arith.constant 0 : index
    %c0_24 = arith.constant 0 : index
    %78 = vector.load %arg5[%c0_22, %c0_23, %c0_24] : memref<1x8x128xf32, #tpu.memory_space<vmem>>, vector<1x8x128xf32>
    tpu.vector_store %arg5[%c0_22, %c0_23, %c0_24], %77 {strides = array<i32>} : memref<1x8x128xf32, #tpu.memory_space<vmem>>, vector<1x8x128xf32>,
    %c0_25 = arith.constant 0 : index
    %c0_26 = arith.constant 0 : index
    %79 = vector.load %arg2[%c0_25, %c0_26] : memref<8x256xf32, #tpu.memory_space<vmem>>, vector<8x256xf32>
    %80 = arith.mulf %79, %72 : vector<8x256xf32>
    %c0_27 = arith.constant 0 : index
    %c0_28 = arith.constant 0 : index
    %81 = vector.load %arg4[%c0_27, %c0_28] : memref<8x256xf32, #tpu.memory_space<vmem>>, vector<8x256xf32>
    tpu.vector_store %arg4[%c0_27, %c0_28], %80 {strides = array<i32>} : memref<8x256xf32, #tpu.memory_space<vmem>>, vector<8x256xf32>,
    return
  }
  func.func @transform_0(%arg0: i32) -> (i32, i32) {
    %c0_i32 = arith.constant 0 : i32
    %c0_i32_0 = arith.constant 0 : i32
    return %arg0, %c0_i32 : i32, i32
  }
  func.func @transform_1(%arg0: i32) -> (i32, i32) {
    %c0_i32 = arith.constant 0 : i32
    %c0_i32_0 = arith.constant 0 : i32
    return %arg0, %c0_i32 : i32, i32
  }
  func.func @transform_2(%arg0: i32) -> (i32, i32) {
    %c0_i32 = arith.constant 0 : i32
    %c0_i32_0 = arith.constant 0 : i32
    %c0_i32_1 = arith.constant 0 : i32
    return %c0_i32, %c0_i32_0 : i32, i32
  }
  func.func @transform_3(%arg0: i32) -> (i32, i32) {
    %c0_i32 = arith.constant 0 : i32
    %c0_i32_0 = arith.constant 0 : i32
    return %arg0, %c0_i32 : i32, i32
  }
  func.func @transform_4(%arg0: i32) -> (i32, i32, i32) {
    %c0_i32 = arith.constant 0 : i32
    %c0_i32_0 = arith.constant 0 : i32
    %c0_i32_1 = arith.constant 0 : i32
    return %arg0, %c0_i32, %c0_i32_0 : i32, i32, i32
  }
}

</mosaic_0001>

<bundles_post_ra>
// kernel: tpu_custom_call.1
= control target key start
LH: loop header
LB: loop body
LE: loop exit
PB: predicated region body
PF: predicated region fallthrough
CT: control target
= control target key end

     0   :  { %10 = vsyncpa [#allocation3], 0  ;;  %s645_s0 = inlined_call_operand.hbm [shape: f32[8,256], index: 0, kind: input, shape index: {}]   ;;  %s646_s1 = inlined_call_operand.hbm [shape: f32[8,256], index: 1, kind: input, shape index: {}]   ;;  %s647_s2 = inlined_call_operand.hbm [shape: f32[8,256], index: 2, kind: input, shape index: {}]   ;;  %s648_s3 = inlined_call_operand.hbm [shape: f32[8,256], index: 3, kind: output, shape index: {0}]   ;;  %s649_s4 = inlined_call_operand.hbm [shape: f32[1,8,128], index: 4, kind: output, shape index: {1}]  }
   0x1   :  { %11 = vsyncpa [#allocation6], 0 }
   0x2   :  { %12 = vsyncpa [#allocation4], 0 }
   0x3   :  { %13 = vsyncpa [#allocation10], 0  ;;  %s506_s15 = smov [#allocation5]   ;;  %s507_s17 = smov [#allocation2]  }
   0x4   :  { %s30_s16 = sshll.u32 %s506_s15, 4  ;;  %s20_s18 = sshll.u32 %s507_s17, 4  ;;  %s31_s16 = int_to_ptr.vmem [resolvable:$true] %s30_s16  ;;  %s21_s18 = int_to_ptr.vmem [resolvable:$true] %s20_s18 }
   0x5   :  { %s388_s21 = scalar_lea.hbm %s646_s1, 256 }
   0x6   :  { %p389_p0 = scmp.ne.s32.totalorder %s646_s1, %s388_s21  ;;  %p392_p1 = scmp.lt.u32.totalorder %s388_s21, %s646_s1 }
   0x8   :  { %p394_p2 = pnand %p392_p1, %p389_p0 }
   0xa   :  { %397 = shalt.err (!%p394_p2)
}
   0xb   :  { %s398_s26 = scalar_lea.vmem %s31_s16, 256  ;;  %p403_p4 = scmp.lt.s32.totalorder %s31_s16, %s31_s16 }
   0xc   :  { %p399_p3 = scmp.ne.s32.totalorder %s31_s16, %s398_s26  ;;  %p404_p5 = scmp.lt.s32.totalorder %s398_s26, %s398_s26 }
   0xe   :  { %p405_p6 = por %p404_p5, %p403_p4 }
  0x10   :  { %p406_p7 = pnand %p405_p6, %p399_p3 }
  0x12   :  { %409 = shalt.err (!%p406_p7)
}
  0x13   :  { %33 = dma.hbm_to_vmem [thread:$0]  %s646_s1, 256, %s31_s16, [#allocation6]  }
  0x14   :  { %s410_s5 = scalar_lea.hbm %s645_s0, 256 }
  0x15   :  { %p411_p8 = scmp.ne.s32.totalorder %s645_s0, %s410_s5  ;;  %p414_p9 = scmp.lt.u32.totalorder %s410_s5, %s645_s0 }
  0x17   :  { %p416_p10 = pnand %p414_p9, %p411_p8 }
  0x19   :  { %419 = shalt.err (!%p416_p10)
}
  0x1a   :  { %s420_s10 = scalar_lea.vmem %s21_s18, 256  ;;  %p425_p12 = scmp.lt.s32.totalorder %s21_s18, %s21_s18 }
  0x1b   :  { %p421_p11 = scmp.ne.s32.totalorder %s21_s18, %s420_s10  ;;  %p426_p13 = scmp.lt.s32.totalorder %s420_s10, %s420_s10 }
  0x1d   :  { %p427_p0 = por %p426_p13, %p425_p12 }
  0x1f   :  { %p428_p1 = pnand %p427_p0, %p421_p11 }
  0x21   :  { %431 = shalt.err (!%p428_p1)
}
  0x22   :  { %23 = dma.hbm_to_vmem [thread:$0]  %s645_s0, 256, %s21_s18, [#allocation3]  }
  0x23   :  { %s508_s12 = smov [#allocation7]   ;;  %s432_s16 = scalar_lea.hbm %s647_s2, 256 }
  0x24   :  { %s40_s13 = sshll.u32 %s508_s12, 4  ;;  %p433_p2 = scmp.ne.s32.totalorder %s647_s2, %s432_s16  ;;  %s41_s13 = int_to_ptr.vmem [resolvable:$true] %s40_s13 }
  0x25   :  { %p436_p3 = scmp.lt.u32.totalorder %s432_s16, %s647_s2 }
  0x27   :  { %p438_p4 = pnand %p436_p3, %p433_p2 }
  0x29   :  { %441 = shalt.err (!%p438_p4)
}
  0x2a   :  { %s442_s22 = scalar_lea.vmem %s41_s13, 256  ;;  %p447_p6 = scmp.lt.s32.totalorder %s41_s13, %s41_s13 }
  0x2b   :  { %p443_p5 = scmp.ne.s32.totalorder %s41_s13, %s442_s22  ;;  %p448_p7 = scmp.lt.s32.totalorder %s442_s22, %s442_s22 }
  0x2d   :  { %p449_p8 = por %p448_p7, %p447_p6 }
  0x2f   :  { %p450_p9 = pnand %p449_p8, %p443_p5 }
  0x31   :  { %453 = shalt.err (!%p450_p9)
}
  0x32   :  { %43 = dma.hbm_to_vmem [thread:$0]  %s647_s2, 256, %s41_s13, [#allocation6]  }
  0x33   :  { %498 = dma.done.wait [#allocation3], 256  }
  0x34   :  { %499 = vsyncadd [#allocation3], 4294967040 }
  0x35   :  { %500 = dma.done.wait [#allocation6], 512  }
  0x36   :  { %501 = vsyncadd [#allocation6], 4294966784  ;;  %v53_v0 = vld [vmem:[#allocation2] sm:$0xff]  ;;  %v54_v1 = vld [vmem:[#allocation2 + $0x8] sm:$0xff]  ;;  %v509_v2 = vmov 0.0   ;;  %s510_s23 = smov 3   ;;  %v74_v6 = vlaneseq }
  0x37   :  { %vm55_vm0 = vcmp.lt.f32.partialorder %v53_v0, 0.0052244896  ;;  %vm56_vm1 = vcmp.lt.f32.partialorder %v54_v1, 0.0052244896  ;;  %s511_s24 = smov 1   ;;  %s512_s2 = smov 2  }
  0x38   :  { %v585_v3 = vsel %vm55_vm0, 1.0, %v509_v2  ;;  %v587_v4 = vsel %vm56_vm1, 1.0, %v509_v2  ;;  %s513_s25 = smov 127   ;;  %s514_s26 = smov 126   ;;  %v75_v7 = vshrl.u32 %v74_v6, 7  ;;  %vm68_vm2 = vcmask 23552  }
  0x39   :  { %v358_v5 = vpack.i.bf16 %v587_v4, %v585_v3  ;;  %s515_s27 = smov 125   ;;  %v61_v10 = vld [vmem:[#allocation7] ss:$8 sm:$0x3]  ;;  %vm120_vm3 = vcmask 7168   ;;  %vm94_vm4 = vcmask 15360  }
  0x3a   :  { %v591_v8 = vsub.s32 0, %v75_v7  ;;  %v593_v9 = vsub.s32 1, %v75_v7  ;;  %v115_v11 = vld [vmem:[#allocation7 + $0x2] ss:$8 sm:$0x3]  ;;  %vm146_vm5 = vcmask 1039360  }
  0x3b   :  { %359 = vrot.lane.b32.xlu0 %v358_v5, %s510_s23  ;;  %369 = vrot.lane.b32.xlu1 %v358_v5, %s511_s24  ;;  %v89_v12 = vld [vmem:[#allocation7 + $0x1] ss:$8 sm:$0x3]  ;;  %v141_v15 = vld [vmem:[#allocation7 + $0x3] ss:$8 sm:$0x3] }
  0x3c   :  { %v77_v13 = vrot.slane %v61_v10, %v591_v8  ;;  %v81_v14 = vrot.slane %v61_v10, %v593_v9  ;;  %v167_v16 = vld [vmem:[#allocation7 + $0x4] ss:$8 sm:$0x3]  ;;  %v129_v18 = vrot.slane %v115_v11, %v591_v8  ;;  %v133_v19 = vrot.slane %v115_v11, %v593_v9  ;;  %v193_v34 = vld [vmem:[#allocation7 + $0x5] ss:$8 sm:$0x3] }
  0x3d   :  { %v103_v21 = vrot.slane %v89_v12, %v591_v8  ;;  %v107_v22 = vrot.slane %v89_v12, %v593_v9  ;;  %v155_v27 = vrot.slane %v141_v15, %v591_v8  ;;  %v159_v28 = vrot.slane %v141_v15, %v593_v9  ;;  %s516_s28 = smov 48   ;;  %s517_s29 = smov 32  }
  0x3e   :  { %vm172_vm6 = vcmask 1031168   ;;  %v181_v29 = vrot.slane %v167_v16, %v591_v8  ;;  %v185_v39 = vrot.slane %v167_v16, %v593_v9  ;;  %vm198_vm7 = vcmask 1022976   ;;  %s518_s30 = smov 16   ;;  %s519_s5 = smov 112  }
  0x3f   :  { %364 = vrot.lane.b32.xlu0 %v358_v5, %s512_s2  ;;  %374 = vrot.lane.b32.xlu1 %v358_v5, %s513_s25  ;;  %v207_v46 = vrot.slane %v193_v34, %v591_v8  ;;  %v211_v47 = vrot.slane %v193_v34, %v593_v9  ;;  %s520_s6 = smov 96   ;;  %s521_s7 = smov 80   ;;  %vm224_vm8 = vcmask 392192   ;;  %vm235_vm9 = vcmask 261120  }
  0x40   :  { %vm246_vm10 = vcmask 130048   ;;  %vm257_vm11 = vcmask 916480   ;;  %vm268_vm12 = vcmask 785408   ;;  %vm279_vm13 = vcmask 654336   ;;  %s522_s8 = smov [#allocation8]  }
  0x41   :  { %s312_s9 = sshll.u32 %s522_s8, 4  ;;  %s313_s9 = int_to_ptr.vmem [resolvable:$true] %s312_s9 }
  0x42   :  { %s454_s10 = scalar_lea.vmem %s313_s9, 256  ;;  %p459_p11 = scmp.lt.s32.totalorder %s313_s9, %s313_s9 }
  0x43   :  { %379 = vrot.lane.b32.xlu0 %v358_v5, %s514_s26  ;;  %384 = vrot.lane.b32.xlu1 %v358_v5, %s515_s27  ;;  %p455_p10 = scmp.ne.s32.totalorder %s313_s9, %s454_s10  ;;  %p460_p12 = scmp.lt.s32.totalorder %s454_s10, %s454_s10 }
  0x45   :  { %p461_p13 = por %p460_p12, %p459_p11 }
  0x47   :  { %p462_p0 = pnand %p461_p13, %p455_p10 }
  0xad   :  { %v360_v17 = vpop.permute.xlu0 %359  ;;  %v370_v20 = vpop.permute.xlu1 %369 }
  0xae   :  { %v362_v23 = vunpack.i.h.bf16 %v360_v17  ;;  %v361_v24 = vunpack.i.l.bf16 %v360_v17  ;;  %v372_v25 = vunpack.i.h.bf16 %v370_v20  ;;  %v371_v26 = vunpack.i.l.bf16 %v370_v20 }
  0xb0   :  { %v69_v30 = vsel %vm68_vm2, %v361_v24, %v362_v23  ;;  %v72_v31 = vsel %vm68_vm2, 0.0, %v361_v24  ;;  %v121_v32 = vsel %vm120_vm3, %v371_v26, %v372_v25  ;;  %v124_v33 = vsel %vm120_vm3, 0.0, %v371_v26 }
  0xb1   :  { %v84_v35 = vmul.f32 %v77_v13, %v72_v31  ;;  %v85_v36 = vmul.f32 %v81_v14, %v69_v30  ;;  %v365_v37 = vpop.permute.xlu0 %364  ;;  %v375_v38 = vpop.permute.xlu1 %374  ;;  %v136_v44 = vmul.f32 %v129_v18, %v124_v33  ;;  %v137_v45 = vmul.f32 %v133_v19, %v121_v32 }
  0xb2   :  { %v367_v40 = vunpack.i.h.bf16 %v365_v37  ;;  %v366_v41 = vunpack.i.l.bf16 %v365_v37  ;;  %v377_v42 = vunpack.i.h.bf16 %v375_v38  ;;  %v376_v43 = vunpack.i.l.bf16 %v375_v38 }
  0xb3   :  { %v86_v52 = vmax.f32 %v585_v3, %v84_v35  ;;  %v87_v53 = vmax.f32 %v587_v4, %v85_v36 }
  0xb4   :  { %v95_v48 = vsel %vm94_vm4, %v366_v41, %v367_v40  ;;  %v98_v49 = vsel %vm94_vm4, 0.0, %v366_v41  ;;  %v150_v50 = vsel %vm146_vm5, %v377_v42, 0.0  ;;  %v147_v51 = vsel %vm146_vm5, %v376_v43, %v377_v42 }
  0xb5   :  { %v110_v54 = vmul.f32 %v103_v21, %v98_v49  ;;  %v111_v55 = vmul.f32 %v107_v22, %v95_v48  ;;  %v380_v56 = vpop.permute.xlu0 %379  ;;  %v385_v57 = vpop.permute.xlu1 %384  ;;  %v163_v0 = vmul.f32 %v159_v28, %v150_v50  ;;  %v162_v1 = vmul.f32 %v155_v27, %v147_v51 }
  0xb6   :  { %v382_v58 = vunpack.i.h.bf16 %v380_v56  ;;  %v381_v59 = vunpack.i.l.bf16 %v380_v56  ;;  %v387_v60 = vunpack.i.h.bf16 %v385_v57  ;;  %v386_v61 = vunpack.i.l.bf16 %v385_v57 }
  0xb7   :  { %v112_v62 = vmax.f32 %v86_v52, %v110_v54  ;;  %v113_v63 = vmax.f32 %v87_v53, %v111_v55  ;;  %v300_v54 = vld [vmem:[#allocation5] sm:$0xff]  ;;  %v301_v55 = vld [vmem:[#allocation5 + $0x8] sm:$0xff] }
  0xb8   :  { %v176_v2 = vsel %vm172_vm6, %v382_v58, 0.0  ;;  %v173_v5 = vsel %vm172_vm6, %v381_v59, %v382_v58  ;;  %v202_v3 = vsel %vm198_vm7, %v387_v60, 0.0  ;;  %v199_v4 = vsel %vm198_vm7, %v386_v61, %v387_v60 }
  0xb9   :  { %v138_v6 = vmax.f32 %v112_v62, %v136_v44  ;;  %v139_v7 = vmax.f32 %v113_v63, %v137_v45  ;;  %v189_v8 = vmul.f32 %v185_v39, %v176_v2  ;;  %v188_v9 = vmul.f32 %v181_v29, %v173_v5 }
  0xba   :  { %v215_v12 = vmul.f32 %v211_v47, %v202_v3  ;;  %v214_v13 = vmul.f32 %v207_v46, %v199_v4 }
  0xbb   :  { %v164_v10 = vmax.f32 %v138_v6, %v162_v1  ;;  %v165_v11 = vmax.f32 %v139_v7, %v163_v0 }
  0xbd   :  { %v190_v14 = vmax.f32 %v164_v10, %v188_v9  ;;  %v191_v15 = vmax.f32 %v165_v11, %v189_v8 }
  0xbf   :  { %v216_v16 = vmax.f32 %v190_v14, %v214_v13  ;;  %v217_v17 = vmax.f32 %v191_v15, %v215_v12 }
  0xc1   :  { %220 = vrot.lane.b32.xlu0 %v216_v16, %s516_s28  ;;  %222 = vrot.lane.b32.xlu1 %v217_v17, %s516_s28 }
  0xc5   :  { %231 = vrot.lane.b32.xlu0 %v216_v16, %s517_s29  ;;  %233 = vrot.lane.b32.xlu1 %v217_v17, %s517_s29 }
  0xc9   :  { %242 = vrot.lane.b32.xlu0 %v216_v16, %s518_s30  ;;  %244 = vrot.lane.b32.xlu1 %v217_v17, %s518_s30 }
  0xcd   :  { %253 = vrot.lane.b32.xlu0 %v216_v16, %s519_s5  ;;  %255 = vrot.lane.b32.xlu1 %v217_v17, %s519_s5 }
  0xd1   :  { %264 = vrot.lane.b32.xlu0 %v216_v16, %s520_s6  ;;  %266 = vrot.lane.b32.xlu1 %v217_v17, %s520_s6 }
  0xd5   :  { %275 = vrot.lane.b32.xlu0 %v216_v16, %s521_s7  ;;  %277 = vrot.lane.b32.xlu1 %v217_v17, %s521_s7 }
 0x133   :  { %v221_v18 = vpop.permute.xlu0 %220  ;;  %v223_v19 = vpop.permute.xlu1 %222 }
 0x134   :  { %v228_v24 = vsel %vm224_vm8, 0.0, %v221_v18  ;;  %v225_v25 = vsel %vm224_vm8, %v221_v18, %v223_v19 }
 0x135   :  { %v229_v28 = vmax.f32 %v216_v16, %v228_v24  ;;  %v230_v29 = vmax.f32 %v217_v17, %v225_v25 }
 0x137   :  { %v232_v20 = vpop.permute.xlu0 %231  ;;  %v234_v21 = vpop.permute.xlu1 %233 }
 0x138   :  { %v239_v26 = vsel %vm235_vm9, 0.0, %v232_v20  ;;  %v236_v27 = vsel %vm235_vm9, %v232_v20, %v234_v21 }
 0x139   :  { %v240_v34 = vmax.f32 %v229_v28, %v239_v26  ;;  %v241_v35 = vmax.f32 %v230_v29, %v236_v27 }
 0x13b   :  { %v243_v22 = vpop.permute.xlu0 %242  ;;  %v245_v23 = vpop.permute.xlu1 %244 }
 0x13c   :  { %v250_v32 = vsel %vm246_vm10, 0.0, %v243_v22  ;;  %v247_v33 = vsel %vm246_vm10, %v243_v22, %v245_v23 }
 0x13d   :  { %v251_v38 = vmax.f32 %v240_v34, %v250_v32  ;;  %v252_v39 = vmax.f32 %v241_v35, %v247_v33 }
 0x13f   :  { %v254_v30 = vpop.permute.xlu0 %253  ;;  %v256_v31 = vpop.permute.xlu1 %255 }
 0x140   :  { %v258_v36 = vsel %vm257_vm11, %v254_v30, %v256_v31  ;;  %v261_v37 = vsel %vm257_vm11, %v256_v31, 0.0 }
 0x141   :  { %v262_v44 = vmax.f32 %v251_v38, %v258_v36  ;;  %v263_v45 = vmax.f32 %v252_v39, %v261_v37 }
 0x143   :  { %v265_v40 = vpop.permute.xlu0 %264  ;;  %v267_v41 = vpop.permute.xlu1 %266 }
 0x144   :  { %v269_v42 = vsel %vm268_vm12, %v265_v40, %v267_v41  ;;  %v272_v43 = vsel %vm268_vm12, %v267_v41, 0.0 }
 0x145   :  { %v273_v46 = vmax.f32 %v262_v44, %v269_v42  ;;  %v274_v47 = vmax.f32 %v263_v45, %v272_v43 }
 0x147   :  { %v276_v48 = vpop.permute.xlu0 %275  ;;  %v278_v49 = vpop.permute.xlu1 %277 }
 0x148   :  { %v280_v50 = vsel %vm279_vm13, %v276_v48, %v278_v49  ;;  %v283_v51 = vsel %vm279_vm13, %v278_v49, 0.0 }
 0x149   :  { %v284_v52 = vmax.f32 %v273_v46, %v280_v50  ;;  %v285_v53 = vmax.f32 %v274_v47, %v283_v51 }
 0x14b   :  { %v286_v56 = vsub.f32 1.0, %v284_v52  ;;  %v287_v57 = vsub.f32 1.0, %v285_v53 }
 0x14d   :  { %v302_v58 = vmul.f32 %v300_v54, %v286_v56  ;;  %v303_v59 = vmul.f32 %v301_v55, %v287_v57  ;;  %v288_v60 = vadd.f32 %v287_v57, %v286_v56 }
 0x14f   :  { %304 = vst [vmem:[#allocation8] sm:$0xff] %v302_v58  ;;  %305 = vst [vmem:[#allocation8 + $0x8] sm:$0xff] %v303_v59  ;;  %289 = vadd.xlane.f32.xlu0 %v288_v60 }
 0x150   :  { %465 = shalt.err (!%p462_p0)
}
 0x151   :  { %s466_s12 = scalar_lea.hbm %s648_s3, 256 }
 0x152   :  { %p467_p1 = scmp.ne.s32.totalorder %s648_s3, %s466_s12  ;;  %p470_p2 = scmp.lt.u32.totalorder %s466_s12, %s648_s3 }
 0x154   :  { %p472_p3 = pnand %p470_p2, %p467_p1 }
 0x156   :  { %475 = shalt.err (!%p472_p3)
}
 0x157   :  { %315 = dma.vmem_to_hbm [thread:$0]  %s313_s9, 256, %s648_s3, [#allocation4]  }
 0x158   :  { %s523_s20 = smov [#allocation9]  }
 0x159   :  { %s322_s21 = sshll.u32 %s523_s20, 4  ;;  %s323_s21 = int_to_ptr.vmem [resolvable:$true] %s322_s21 }
 0x15a   :  { %s476_s0 = scalar_lea.vmem %s323_s21, 128  ;;  %p481_p5 = scmp.lt.s32.totalorder %s323_s21, %s323_s21 }
 0x15b   :  { %p477_p4 = scmp.ne.s32.totalorder %s323_s21, %s476_s0  ;;  %p482_p6 = scmp.lt.s32.totalorder %s476_s0, %s476_s0 }
 0x15d   :  { %p483_p7 = por %p482_p6, %p481_p5 }
 0x15f   :  { %p484_p8 = pnand %p483_p7, %p477_p4 }
 0x1dc   :  { %v290_v61 = vpop.xlane.xlu0 %289 }
 0x1dd   :  { %v291_v62 = vrot.slane %v290_v61, 4 }
 0x1df   :  { %v292_v63 = vadd.f32 %v291_v62, %v290_v61 }
 0x1e1   :  { %v293_v0 = vrot.slane %v292_v63, 2 }
 0x1e3   :  { %v294_v1 = vadd.f32 %v293_v0, %v292_v63 }
 0x1e5   :  { %v295_v2 = vrot.slane %v294_v1, 1 }
 0x1e7   :  { %v296_v5 = vadd.f32 %v295_v2, %v294_v1 }
 0x1e9   :  { %338 = vpush %v296_v5 }
 0x21a   :  { %s339_s22 = spop %338 }
 0x21b   :  { %v298_v3 = vstv %s339_s22 }
 0x21c   :  { %299 = vst [vmem:[#allocation9] sm:$0xff] %v298_v3 }
 0x21d   :  { %487 = shalt.err (!%p484_p8)
}
 0x21e   :  { %s488_s23 = scalar_lea.hbm %s649_s4, 128 }
 0x21f   :  { %p489_p9 = scmp.ne.s32.totalorder %s649_s4, %s488_s23  ;;  %p492_p10 = scmp.lt.u32.totalorder %s488_s23, %s649_s4 }
 0x221   :  { %p494_p11 = pnand %p492_p10, %p489_p9 }
 0x223   :  { %497 = shalt.err (!%p494_p11)
}
 0x224   :  { %325 = dma.vmem_to_hbm [thread:$0]  %s323_s21, 128, %s649_s4, [#allocation10]  }
 0x225   :  { %502 = dma.done.wait [#allocation4], 256  }
 0x226   :  { %503 = vsyncadd [#allocation4], 4294967040 }
 0x227   :  { %504 = dma.done.wait [#allocation10], 128  }
 0x228   :  { %505 = vsyncadd [#allocation10], 4294967168 }
 0x229   :  { %332 = vsyncpa [#allocation3], 1 }
 0x22a   :  { %333 = vsyncpa [#allocation6], 1 }
 0x22b   :  { %334 = vsyncpa [#allocation4], 1 }
 0x22c   :  { %335 = vsyncpa [#allocation10], 1 }

</bundles_post_ra>
